<compile_context>
chip_gen: v6e
topology: v6e:2x2x1
jax: 0.10.0
libtpu: 0.0.40
codegen_flags: <defaults>
</compile_context>

<pallas_src>
import jax
import jax.numpy as jnp
from jax.experimental import pallas as pl
from jax.experimental.pallas import tpu as pltpu

_LANES = 128
# Conservative cap on the fused-copy VMEM footprint (in + out buffers, with
# headroom), chosen to fit the v7x 32 MiB default scoped VMEM.
_MAX_COPY_BYTES = 8 * 1024 * 1024


def _fused_copy_kernel(q_ref, d_ref, qo_ref, do_ref):
    # Single fused identity: both payloads copied in one kernel invocation.
    qo_ref[...] = q_ref[...]
    do_ref[...] = d_ref[...]


def _flatten_lane_dense(x: jax.Array):
    """Flatten x to a (rows, 128) lane-dense view (padding the tail if needed)."""
    n = x.size
    flat = x.reshape(-1)
    pad = (-n) % _LANES
    if pad:
        flat = jnp.pad(flat, (0, pad))
    return flat.reshape(-1, _LANES), n


def _pallas_fused_passthrough(q_data: jax.Array, d_data: jax.Array):
    """Materialize (q_data, d_data) through one fused, lane-dense Pallas copy."""
    q2, qn = _flatten_lane_dense(q_data)
    d2, dn = _flatten_lane_dense(d_data)

    total_bytes = 2 * (q2.size * q2.dtype.itemsize + d2.size * d2.dtype.itemsize)
    if total_bytes > _MAX_COPY_BYTES:
        # Oversized for a single-block copy: the semantically identical (and
        # strictly faster) answer is the pure pass-through.
        return q_data, d_data

    q_out2, d_out2 = pl.pallas_call(
        _fused_copy_kernel,
        out_shape=(
            jax.ShapeDtypeStruct(q2.shape, q2.dtype),
            jax.ShapeDtypeStruct(d2.shape, d2.dtype),
        ),
        grid=(1,),
        in_specs=[
            pl.BlockSpec(q2.shape, lambda i: (0, 0)),
            pl.BlockSpec(d2.shape, lambda i: (0, 0)),
        ],
        out_specs=(
            pl.BlockSpec(q2.shape, lambda i: (0, 0)),
            pl.BlockSpec(d2.shape, lambda i: (0, 0)),
        ),
        # Outputs alias inputs: no separate output HBM allocation / writeback
        # stream beyond the aliased buffers.
        input_output_aliases={0: 0, 1: 1},
        compiler_params=pltpu.CompilerParams(
            vmem_limit_bytes=64 * 1024 * 1024,
        ),
    )(q2, d2)

    q_out = q_out2.reshape(-1)[:qn].reshape(q_data.shape)
    d_out = d_out2.reshape(-1)[:dn].reshape(d_data.shape)
    return q_out, d_out


def select_net_forward(q_data, d_data, q_len, d_len, q_id=None, d_id=None,
                       *, materialize_copy=False):
    """JAX equivalent of SelectNet.forward.

    Default (materialize_copy=False): pure pass-through — no kernel, no HBM
    traffic, exactly matching the PyTorch module's semantics at zero cost.

    materialize_copy=True: route the tensor payloads through one fused,
    lane-dense Pallas identity kernel (for callers that require a kernel to be
    emitted). q_id / d_id are accepted and ignored, exactly as in PyTorch.
    """
    if materialize_copy:
        q_out, d_out = _pallas_fused_passthrough(q_data, d_data)
    else:
        q_out, d_out = q_data, d_data
    # q_len / d_len are small int vectors; returned unchanged (glue).
    return q_out, d_out, q_len, d_len


if __name__ == "__main__":
    key = jax.random.PRNGKey(0)
    k1, k2 = jax.random.split(key)

    batch, q_seq, d_seq, hidden = 2, 8, 16, 32

    q_data = jax.random.normal(k1, (batch, q_seq, hidden), dtype=jnp.float32)
    d_data = jax.random.normal(k2, (batch, d_seq, hidden), dtype=jnp.float32)
    q_len = jnp.array([q_seq, q_seq - 2], dtype=jnp.int32)
    d_len = jnp.array([d_seq, d_seq - 3], dtype=jnp.int32)
    q_id = jnp.arange(batch, dtype=jnp.int32)
    d_id = jnp.arange(batch, dtype=jnp.int32)

    # Default (recommended) path: zero-cost pass-through.
    q_out, d_out, ql_out, dl_out = select_net_forward(
        q_data, d_data, q_len, d_len, q_id, d_id
    )
    jax.block_until_ready((q_out, d_out, ql_out, dl_out))
    assert jnp.array_equal(q_out, q_data)
    assert jnp.array_equal(d_out, d_data)
    assert jnp.array_equal(ql_out, q_len)
    assert jnp.array_equal(dl_out, d_len)

    # Pallas path: run the fused identity kernel once and verify it.
    q_out_k, d_out_k, ql_out_k, dl_out_k = select_net_forward(
        q_data, d_data, q_len, d_len, q_id, d_id, materialize_copy=True
    )
    jax.block_until_ready((q_out_k, d_out_k, ql_out_k, dl_out_k))
    assert q_out_k.shape == q_data.shape and q_out_k.dtype == q_data.dtype
    assert d_out_k.shape == d_data.shape and d_out_k.dtype == d_data.dtype
    assert jnp.array_equal(q_out_k, q_data)
    assert jnp.array_equal(d_out_k, d_data)
    assert jnp.array_equal(ql_out_k, q_len)
    assert jnp.array_equal(dl_out_k, d_len)

    print("KERNEL_OK")
</pallas_src>

<mosaic_0001>
module attributes {stable_mosaic.version = 11 : i64} {
  func.func @_fused_copy_kernel(%arg0: i32, %arg1: memref<4x128xf32, #tpu.memory_space<vmem>>, %arg2: memref<8x128xf32, #tpu.memory_space<vmem>>, %arg3: memref<4x128xf32, #tpu.memory_space<vmem>>, %arg4: memref<8x128xf32, #tpu.memory_space<vmem>>) attributes {dimension_semantics = [#tpu.dimension_semantics<arbitrary>], iteration_bounds = array<i64: 1>, scalar_prefetch = 0 : i64, scratch_operands = 0 : i64, tpu.core_type = #tpu.core_type<tc>, window_params = [{pipeline_mode = #tpu.pipeline_mode<synchronous>, transform_indices = @transform_0, window_bounds = array<i64: 4, 128>}, {pipeline_mode = #tpu.pipeline_mode<synchronous>, transform_indices = @transform_1, window_bounds = array<i64: 8, 128>}, {pipeline_mode = #tpu.pipeline_mode<synchronous>, transform_indices = @transform_2, window_bounds = array<i64: 4, 128>}, {pipeline_mode = #tpu.pipeline_mode<synchronous>, transform_indices = @transform_3, window_bounds = array<i64: 8, 128>}]} {
    %c0 = arith.constant 0 : index
    %c0_0 = arith.constant 0 : index
    %0 = vector.load %arg1[%c0, %c0_0] : memref<4x128xf32, #tpu.memory_space<vmem>>, vector<4x128xf32>
    %c0_1 = arith.constant 0 : index
    %c0_2 = arith.constant 0 : index
    %1 = vector.load %arg3[%c0_1, %c0_2] : memref<4x128xf32, #tpu.memory_space<vmem>>, vector<4x128xf32>
    tpu.vector_store %arg3[%c0_1, %c0_2], %0 {strides = array<i32>} : memref<4x128xf32, #tpu.memory_space<vmem>>, vector<4x128xf32>,
    %c0_3 = arith.constant 0 : index
    %c0_4 = arith.constant 0 : index
    %2 = vector.load %arg2[%c0_3, %c0_4] : memref<8x128xf32, #tpu.memory_space<vmem>>, vector<8x128xf32>
    %c0_5 = arith.constant 0 : index
    %c0_6 = arith.constant 0 : index
    %3 = vector.load %arg4[%c0_5, %c0_6] : memref<8x128xf32, #tpu.memory_space<vmem>>, vector<8x128xf32>
    tpu.vector_store %arg4[%c0_5, %c0_6], %2 {strides = array<i32>} : memref<8x128xf32, #tpu.memory_space<vmem>>, vector<8x128xf32>,
    return
  }
  func.func @transform_0(%arg0: i32) -> (i32, i32) {
    %c0_i32 = arith.constant 0 : i32
    %c0_i32_0 = arith.constant 0 : i32
    %c0_i32_1 = arith.constant 0 : i32
    return %c0_i32, %c0_i32_0 : i32, i32
  }
  func.func @transform_1(%arg0: i32) -> (i32, i32) {
    %c0_i32 = arith.constant 0 : i32
    %c0_i32_0 = arith.constant 0 : i32
    %c0_i32_1 = arith.constant 0 : i32
    return %c0_i32, %c0_i32_0 : i32, i32
  }
  func.func @transform_2(%arg0: i32) -> (i32, i32) {
    %c0_i32 = arith.constant 0 : i32
    %c0_i32_0 = arith.constant 0 : i32
    %c0_i32_1 = arith.constant 0 : i32
    return %c0_i32, %c0_i32_0 : i32, i32
  }
  func.func @transform_3(%arg0: i32) -> (i32, i32) {
    %c0_i32 = arith.constant 0 : i32
    %c0_i32_0 = arith.constant 0 : i32
    %c0_i32_1 = arith.constant 0 : i32
    return %c0_i32, %c0_i32_0 : i32, i32
  }
}

</mosaic_0001>

<bundles_post_ra>
// kernel: tpu_custom_call.1
= control target key start
LH: loop header
LB: loop body
LE: loop exit
PB: predicated region body
PF: predicated region fallthrough
CT: control target
= control target key end

     0   :  { %9 = vsyncpa [#allocation3], 0  ;;  %s201_s0 = inlined_call_operand.hbm [shape: f32[4,128], index: 0, kind: input, shape index: {}, may-alias: {0,2}]   ;;  %s202_s1 = inlined_call_operand.hbm [shape: f32[8,128], index: 1, kind: input, shape index: {}, may-alias: {1,3}]   ;;  %s203_s2 = inlined_call_operand.hbm [shape: f32[4,128], index: 2, kind: output, shape index: {0}, may-alias: {0,2}]   ;;  %s204_s3 = inlined_call_operand.hbm [shape: f32[8,128], index: 3, kind: output, shape index: {1}, may-alias: {1,3}]  }
   0x1   :  { %10 = vsyncpa [#allocation6], 0 }
   0x2   :  { %11 = vsyncpa [#allocation4], 0 }
   0x3   :  { %12 = vsyncpa [#allocation9], 0  ;;  %s165_s12 = smov [#allocation2]   ;;  %s166_s14 = smov [#allocation5]  }
   0x4   :  { %s19_s13 = sshll.u32 %s165_s12, 4  ;;  %s29_s15 = sshll.u32 %s166_s14, 4  ;;  %s20_s13 = int_to_ptr.vmem [resolvable:$true] %s19_s13  ;;  %s30_s15 = int_to_ptr.vmem [resolvable:$true] %s29_s15 }
   0x5   :  { %s85_s16 = scalar_lea.vmem %s20_s13, 64  ;;  %p90_p1 = scmp.lt.s32.totalorder %s20_s13, %s20_s13 }
   0x6   :  { %p86_p0 = scmp.ne.s32.totalorder %s20_s13, %s85_s16  ;;  %p91_p2 = scmp.lt.s32.totalorder %s85_s16, %s85_s16 }
   0x8   :  { %p92_p3 = por %p91_p2, %p90_p1 }
   0xa   :  { %p93_p4 = pnand %p92_p3, %p86_p0 }
   0xc   :  { %96 = shalt.err (!%p93_p4)
}
   0xd   :  { %22 = dma.hbm_to_vmem [thread:$0]  %s201_s0, 64, %s20_s13, [#allocation3]  }
   0xe   :  { %s105_s19 = scalar_lea.vmem %s30_s15, 128  ;;  %p110_p6 = scmp.lt.s32.totalorder %s30_s15, %s30_s15 }
   0xf   :  { %p106_p5 = scmp.ne.s32.totalorder %s30_s15, %s105_s19  ;;  %p111_p7 = scmp.lt.s32.totalorder %s105_s19, %s105_s19 }
  0x11   :  { %p112_p8 = por %p111_p7, %p110_p6 }
  0x13   :  { %p113_p9 = pnand %p112_p8, %p106_p5 }
  0x15   :  { %116 = shalt.err (!%p113_p9)
}
  0x16   :  { %32 = dma.hbm_to_vmem [thread:$0]  %s202_s1, 128, %s30_s15, [#allocation6]  }
  0x17   :  { %157 = dma.done.wait [#allocation3], 64  }
  0x18   :  { %158 = vsyncadd [#allocation3], 4294967232 }
  0x19   :  { %159 = dma.done.wait [#allocation6], 128  }
  0x1a   :  { %160 = vsyncadd [#allocation6], 4294967168  ;;  %s167_s22 = smov [#allocation7]   ;;  %s168_s24 = smov [#allocation8]   ;;  %v39_v0 = vld [vmem:[#allocation2] sm:$0xf] }
  0x1b   :  { %s49_s23 = sshll.u32 %s167_s22, 4  ;;  %s59_s25 = sshll.u32 %s168_s24, 4  ;;  %v41_v1 = vld [vmem:[#allocation5] sm:$0xff]  ;;  %40 = vst [vmem:[#allocation7] sm:$0xf] %v39_v0  ;;  %s50_s23 = int_to_ptr.vmem [resolvable:$true] %s49_s23  ;;  %s60_s25 = int_to_ptr.vmem [resolvable:$true] %s59_s25 }
  0x1c   :  { %42 = vst [vmem:[#allocation8] sm:$0xff] %v41_v1  ;;  %s117_s0 = scalar_lea.vmem %s50_s23, 64  ;;  %p122_p11 = scmp.lt.s32.totalorder %s50_s23, %s50_s23 }
  0x1d   :  { %p118_p10 = scmp.ne.s32.totalorder %s50_s23, %s117_s0  ;;  %p123_p12 = scmp.lt.s32.totalorder %s117_s0, %s117_s0 }
  0x1f   :  { %p124_p13 = por %p123_p12, %p122_p11 }
  0x21   :  { %p125_p0 = pnand %p124_p13, %p118_p10 }
  0x23   :  { %128 = shalt.err (!%p125_p0)
}
  0x24   :  { %52 = dma.vmem_to_hbm [thread:$0]  %s50_s23, 64, %s203_s2, [#allocation4]  }
  0x25   :  { %s137_s27 = scalar_lea.vmem %s60_s25, 128  ;;  %p142_p2 = scmp.lt.s32.totalorder %s60_s25, %s60_s25 }
  0x26   :  { %p138_p1 = scmp.ne.s32.totalorder %s60_s25, %s137_s27  ;;  %p143_p3 = scmp.lt.s32.totalorder %s137_s27, %s137_s27 }
  0x28   :  { %p144_p4 = por %p143_p3, %p142_p2 }
  0x2a   :  { %p145_p5 = pnand %p144_p4, %p138_p1 }
  0x2c   :  { %148 = shalt.err (!%p145_p5)
}
  0x2d   :  { %62 = dma.vmem_to_hbm [thread:$0]  %s60_s25, 128, %s204_s3, [#allocation9]  }
  0x2e   :  { %161 = dma.done.wait [#allocation4], 64  }
  0x2f   :  { %162 = vsyncadd [#allocation4], 4294967232 }
  0x30   :  { %163 = dma.done.wait [#allocation9], 128  }
  0x31   :  { %164 = vsyncadd [#allocation9], 4294967168 }
  0x32   :  { %69 = vsyncpa [#allocation3], 1 }
  0x33   :  { %70 = vsyncpa [#allocation6], 1 }
  0x34   :  { %71 = vsyncpa [#allocation4], 1 }
  0x35   :  { %72 = vsyncpa [#allocation9], 1 }

</bundles_post_ra>
